<compile_context>
chip_gen: v7x
topology: tpu7x:2x2x1
jax: 0.10.0
libtpu: 0.0.40
codegen_flags: <defaults>
</compile_context>

<pallas_src>
import functools

import numpy as np
import jax
import jax.numpy as jnp
from jax.experimental import pallas as pl
from jax.experimental.pallas import tpu as pltpu

BN_EPS = 1e-5
_LANE_PAD = 8                       # flat sublane pad in front of scratch interiors
_VMEM_BUDGET = 40 * 1024 * 1024     # per-grid-step working-set target (fits v7x 64 MiB)
_VMEM_LIMIT = 48 * 1024 * 1024      # explicit scoped-VMEM limit for the compiler


# ----------------------------------------------------------------------------
# Kernel 1: ConvTranspose2d(C1 -> C1//2, kernel=2, stride=2)
# ----------------------------------------------------------------------------
def _upsample_kernel(x1_ref, w_ref, b_ref, o_ref, *, rows, W1, Ch):
    """One block of `rows` low-res image rows per grid step.

    x1_ref : (rows*W1, C1)      bf16, flattened row-major
    w_ref  : (C1, 4*Ch)         bf16, columns ordered (dy, dx, c)
    b_ref  : (1, 4*Ch)          f32 bias, tiled over the 4 taps
    o_ref  : (rows, 2, W1, 2*Ch) bf16; o[i, dy, j, dx*Ch+c] == up[2i+dy, 2j+dx, c]
    """
    # single fused matmul for both dy taps
    y = jnp.dot(x1_ref[...], w_ref[...], preferred_element_type=jnp.float32)
    y = (y + b_ref[...]).astype(jnp.bfloat16)            # (rows*W1, 4*Ch)

    dense_ok = (W1 % 16 == 0) and ((2 * Ch) % 128 == 0)  # aligned no-op shape cast
    for dy in range(2):
        blk = y[:, dy * 2 * Ch:(dy + 1) * 2 * Ch]        # (rows*W1, 2*Ch)
        if dense_ok:
            o_ref[:, dy, :, :] = blk.reshape(rows, W1, 2 * Ch)   # one store per dy
        else:
            # safe fallback for unaligned (toy) shapes; each store is still one
            # full up-sampled image row.  TODO(synk): pad W1/Ch for dense path.
            for i in range(rows):
                o_ref[i, dy, :, :] = blk[i * W1:(i + 1) * W1, :]


def _pick_upsample_rows(H1, W1, C1, Ch, budget):
    per_row = 2 * (W1 * C1 * 2) + 2 * (2 * W1 * 2 * Ch * 2)   # dbl-buffered bf16 in+out
    for r in range(H1, 0, -1):
        if H1 % r:
            continue
        if r != H1 and (r * W1) % 8:
            continue
        if r * per_row <= budget:
            return r
    return H1


def conv_transpose2x2(x1_nhwc, w_up, b_up):
    """x1: (N, H1, W1, C1);  w_up: (dy, dx, C1, Ch);  b_up: (Ch,).
    Returns (N, 2*H1, 2*W1, Ch) bf16."""
    N, H1, W1, C1 = x1_nhwc.shape
    Ch = w_up.shape[-1]
    # (dy, dx, C1, Ch) -> (C1, dy*2Ch + dx*Ch + c): one matmul covers all 4 taps
    w4 = jnp.transpose(w_up, (2, 0, 1, 3)).reshape(C1, 4 * Ch).astype(jnp.bfloat16)
    b4 = jnp.tile(b_up, 4)[None, :].astype(jnp.float32)
    x1f = x1_nhwc.reshape(N, H1 * W1, C1).astype(jnp.bfloat16)

    rows = _pick_upsample_rows(H1, W1, C1, Ch, _VMEM_BUDGET)
    grid = (N, H1 // rows)

    y6 = pl.pallas_call(
        functools.partial(_upsample_kernel, rows=rows, W1=W1, Ch=Ch),
        out_shape=jax.ShapeDtypeStruct((N, H1, 2, W1, 2 * Ch), jnp.bfloat16),
        grid=grid,
        in_specs=[
            pl.BlockSpec((None, rows * W1, C1), lambda n, r: (n, r, 0)),
            pl.BlockSpec((C1, 4 * Ch), lambda n, r: (0, 0)),
            pl.BlockSpec((1, 4 * Ch), lambda n, r: (0, 0)),
        ],
        out_specs=pl.BlockSpec((None, rows, 2, W1, 2 * Ch),
                               lambda n, r: (n, r, 0, 0, 0)),
        compiler_params=pltpu.CompilerParams(
            dimension_semantics=("parallel", "parallel"),
            vmem_limit_bytes=_VMEM_LIMIT),
    )(x1f, w4, b4)
    # free (bitcast-compatible) reshape: (N,H1,2,W1,2*Ch) -> (N,2H1,2W1,Ch)
    return y6.reshape(N, 2 * H1, 2 * W1, Ch)


# ----------------------------------------------------------------------------
# Kernel 2: fused  concat([x2, up(x1)]) -> Conv3x3+BN+ReLU -> Conv3x3+BN+ReLU
#           row-strip tiled with a 2-row halo
# ----------------------------------------------------------------------------
def _fused_dc_kernel(x2_ref, y1_ref, w1_ref, t1_ref, w2_ref, t2_ref, o_ref,
                     cat_p, mid_p, *, R, W, C2):
    """One (image, row-strip) per grid step.

    The strip carries a 2-row halo on each side (zero rows at the image border,
    built by the wrapper), so: input rows = R+4, mid rows = R+2, output rows = R.
    Pixels are flattened row-major: strip pixel (row, col) -> row*W + col.

    x2_ref : ((R+4)*W, C2)   skip-connection strip (bf16)
    y1_ref : ((R+4)*W, Ch)   upsampled-x1 strip (bf16)
    w1_ref : (9, C2+Ch, Cm)  conv1 taps, BN scale folded in (bf16)
    w2_ref : (9, Cm, Co)     conv2 taps, BN scale folded in (bf16)
    t1/t2  : (1, C)          folded BN shift (conv bias included), f32
    o_ref  : (R*W, Co)       output strip (f32)
    cat_p  : VMEM ((R+4)*W + 2*PAD, C2+Ch) bf16  -- virtual concat [x2 | up(x1)]
    mid_p  : VMEM ((R+2)*W + 2*PAD, Cm)    bf16  -- DoubleConv intermediate
    """
    PAD = _LANE_PAD
    m_in = (R + 4) * W
    m_mid = (R + 2) * W
    m_out = R * W
    Cm = mid_p.shape[-1]

    # column masks (horizontal SAME padding); hoisted, sliced for conv2
    col = jax.lax.broadcasted_iota(jnp.int32, (m_mid, 1), 0) % W
    mask_l = col >= 1
    mask_r = col <= W - 2

    def conv3x3(scr, w_ref, m):
        # output pixel m (one row below the scratch interior start) reads
        # scr[PAD + ky*W + kx - 1 + m]; all un-masked reads stay in-bounds.
        acc = jnp.zeros((m, w_ref.shape[-1]), jnp.float32)
        for ky in range(3):
            for kx in range(3):
                off = PAD + ky * W + kx - 1
                patch = scr[off:off + m, :]
                if kx == 0:
                    patch = jnp.where(mask_l[:m], patch, jnp.zeros_like(patch))
                elif kx == 2:
                    patch = jnp.where(mask_r[:m], patch, jnp.zeros_like(patch))
                acc = acc + jnp.dot(patch, w_ref[3 * ky + kx],
                                    preferred_element_type=jnp.float32)
        return acc

    # virtual concat([x2, up(x1)], channel axis) -- never materialized in HBM
    cat_p[PAD:PAD + m_in, :C2] = x2_ref[...].astype(jnp.bfloat16)
    cat_p[PAD:PAD + m_in, C2:] = y1_ref[...].astype(jnp.bfloat16)

    # conv1 + BN + ReLU  (BN scale folded into w1, shift in t1)
    mid = jnp.maximum(conv3x3(cat_p, w1_ref, m_mid) + t1_ref[...], 0.0)
    mid_p[PAD:PAD + m_mid, :] = mid.astype(jnp.bfloat16)

    # conv2's SAME padding: the mid halo row that falls outside the image must
    # be zero (not conv1 evaluated outside the image) -> zero it at the borders.
    @pl.when(pl.program_id(1) == 0)
    def _():
        mid_p[PAD:PAD + W, :] = jnp.zeros((W, Cm), jnp.bfloat16)

    @pl.when(pl.program_id(1) == pl.num_programs(1) - 1)
    def _():
        mid_p[PAD + (R + 1) * W:PAD + (R + 2) * W, :] = jnp.zeros((W, Cm),
                                                                  jnp.bfloat16)

    # conv2 + BN + ReLU
    out = jnp.maximum(conv3x3(mid_p, w2_ref, m_out) + t2_ref[...], 0.0)
    o_ref[...] = out.astype(o_ref.dtype)


def _row_strips(x, R):
    """(N, H, W, C) -> (N, S, (R+4)*W, C): non-overlapping R-row output strips,
    each with a 2-row halo on both sides (zero rows at the image border)."""
    N, H, W, C = x.shape
    S = H // R
    xp = jnp.pad(x, ((0, 0), (2, 2), (0, 0), (0, 0)))
    xs = jnp.stack([xp[:, s * R: s * R + R + 4] for s in range(S)], axis=1)
    return xs.reshape(N, S, (R + 4) * W, C)


def _pick_rows_per_strip(H, W, C2, Ch, Cm, Co, budget):
    for R in sorted({d for d in range(1, H + 1) if H % d == 0}, reverse=True):
        m_in, m_mid, m_out = (R + 4) * W, (R + 2) * W, R * W
        usage = (2 * m_in * (C2 + Ch) * 2          # double-buffered bf16 input strips
                 + 2 * m_out * Co * 4              # double-buffered f32 output strip
                 + (m_in + 2 * _LANE_PAD) * (C2 + Ch) * 2   # concat scratch
                 + (m_mid + 2 * _LANE_PAD) * Cm * 2)        # mid scratch
        if usage <= budget:
            return R
    return 1


def fused_concat_doubleconv(x2_nhwc, y1_nhwc, w1, t1, w2, t2, rows_per_strip=None):
    """x2: (N,H,W,C2), y1: (N,H,W,Ch) bf16 -> (N,H,W,Co) f32."""
    N, H, W, C2 = x2_nhwc.shape
    Ch = y1_nhwc.shape[-1]
    Cm = w1.shape[-1]
    Co = w2.shape[-1]

    R = rows_per_strip or _pick_rows_per_strip(H, W, C2, Ch, Cm, Co, _VMEM_BUDGET)
    assert H % R == 0, (H, R)
    S = H // R
    m_in, m_mid, m_out = (R + 4) * W, (R + 2) * W, R * W

    x2s = _row_strips(x2_nhwc.astype(jnp.bfloat16), R)   # (N, S, m_in, C2)
    y1s = _row_strips(y1_nhwc.astype(jnp.bfloat16), R)   # (N, S, m_in, Ch)

    out = pl.pallas_call(
        functools.partial(_fused_dc_kernel, R=R, W=W, C2=C2),
        out_shape=jax.ShapeDtypeStruct((N, S, m_out, Co), jnp.float32),
        grid=(N, S),
        in_specs=[
            pl.BlockSpec((None, None, m_in, C2), lambda n, s: (n, s, 0, 0)),
            pl.BlockSpec((None, None, m_in, Ch), lambda n, s: (n, s, 0, 0)),
            pl.BlockSpec((9, C2 + Ch, Cm), lambda n, s: (0, 0, 0)),
            pl.BlockSpec((1, Cm), lambda n, s: (0, 0)),
            pl.BlockSpec((9, Cm, Co), lambda n, s: (0, 0, 0)),
            pl.BlockSpec((1, Co), lambda n, s: (0, 0)),
        ],
        out_specs=pl.BlockSpec((None, None, m_out, Co), lambda n, s: (n, s, 0, 0)),
        scratch_shapes=[
            pltpu.VMEM((m_in + 2 * _LANE_PAD, C2 + Ch), jnp.bfloat16),
            pltpu.VMEM((m_mid + 2 * _LANE_PAD, Cm), jnp.bfloat16),
        ],
        compiler_params=pltpu.CompilerParams(
            dimension_semantics=("parallel", "parallel"),
            vmem_limit_bytes=_VMEM_LIMIT),
    )(x2s, y1s, w1, t1, w2, t2)
    return out.reshape(N, H, W, Co)


# ----------------------------------------------------------------------------
# Parameters (deterministic, synthetic) + BN folding
# ----------------------------------------------------------------------------
def init_conv_bn(key, cin, cout):
    kw, kb, kg, kbe, km, kv = jax.random.split(key, 6)
    return dict(
        w=jax.random.normal(kw, (3, 3, cin, cout), jnp.float32) / np.sqrt(9.0 * cin),
        b=0.1 * jax.random.normal(kb, (cout,), jnp.float32),
        gamma=1.0 + 0.1 * jax.random.normal(kg, (cout,), jnp.float32),
        beta=0.1 * jax.random.normal(kbe, (cout,), jnp.float32),
        mean=0.1 * jax.random.normal(km, (cout,), jnp.float32),
        var=jax.random.uniform(kv, (cout,), jnp.float32, 0.5, 1.5),
    )


def fold_conv_bn(p):
    """Fold BN running stats + conv bias:  scale into the weights (f32, then
    bf16 cast); return (w9_bf16, shift_f32)."""
    cin, cout = p["w"].shape[2], p["w"].shape[3]
    scale = p["gamma"] / jnp.sqrt(p["var"] + BN_EPS)                 # (cout,)
    shift = p["beta"] + (p["b"] - p["mean"]) * scale
    w9 = (p["w"] * scale[None, None, None, :]).reshape(9, cin, cout)
    return w9.astype(jnp.bfloat16), shift.reshape(1, cout).astype(jnp.float32)


def init_up_params(key, in_channels, out_channels):
    C1 = in_channels
    Ch = C1 // 2
    k1, k2, k3, k4 = jax.random.split(key, 4)
    # ConvTranspose2d weight stored as (dy, dx, cin, cout)
    # (PyTorch layout (cin, cout, kh, kw) would convert via transpose(2,3,0,1)).
    up = dict(
        w=jax.random.normal(k1, (2, 2, C1, Ch), jnp.float32) / np.sqrt(4.0 * C1),
        b=0.1 * jax.random.normal(k2, (Ch,), jnp.float32),
    )
    conv1 = init_conv_bn(k3, C1, out_channels)          # concat has C1 channels
    conv2 = init_conv_bn(k4, out_channels, out_channels)
    return dict(up=up, conv1=conv1, conv2=conv2)


# ----------------------------------------------------------------------------
# Up.forward (Pallas)
# ----------------------------------------------------------------------------
def up_forward(x1_nchw, x2_nchw, params, rows_per_strip=None):
    x1 = jnp.transpose(x1_nchw, (0, 2, 3, 1)).astype(jnp.float32)   # NCHW -> NHWC
    x2 = jnp.transpose(x2_nchw, (0, 2, 3, 1)).astype(jnp.float32)

    # 2x transposed-conv upsample (kernel 1)
    y1 = conv_transpose2x2(x1, params["up"]["w"], params["up"]["b"])

    # F.pad to match x2's spatial size (no-op in the usual even-sized case)
    dY = x2.shape[1] - y1.shape[1]
    dX = x2.shape[2] - y1.shape[2]
    if dY or dX:
        y1 = jnp.pad(y1, ((0, 0), (dY // 2, dY - dY // 2),
                          (dX // 2, dX - dX // 2), (0, 0)))

    # fused concat + DoubleConv (kernel 2), row-strip tiled
    w1, t1 = fold_conv_bn(params["conv1"])
    w2, t2 = fold_conv_bn(params["conv2"])
    out = fused_concat_doubleconv(x2, y1, w1, t1, w2, t2, rows_per_strip)
    return jnp.transpose(out, (0, 3, 1, 2))                         # NHWC -> NCHW


# ----------------------------------------------------------------------------
# Pure-JAX reference (f32) for correctness check
# ----------------------------------------------------------------------------
def _ref_conv_bn_relu(x, p):
    y = jax.lax.conv_general_dilated(
        x, p["w"], window_strides=(1, 1), padding="SAME",
        dimension_numbers=("NHWC", "HWIO", "NHWC"))
    y = y + p["b"]
    y = (y - p["mean"]) / jnp.sqrt(p["var"] + BN_EPS) * p["gamma"] + p["beta"]
    return jnp.maximum(y, 0.0)


def ref_up_forward(x1_nchw, x2_nchw, params):
    x1 = jnp.transpose(x1_nchw, (0, 2, 3, 1)).astype(jnp.float32)
    x2 = jnp.transpose(x2_nchw, (0, 2, 3, 1)).astype(jnp.float32)
    N, H1, W1, C1 = x1.shape
    wup, bup = params["up"]["w"], params["up"]["b"]
    Ch = wup.shape[-1]
    y = jnp.einsum("nhwc,yxcd->nhywxd", x1, wup).reshape(N, 2 * H1, 2 * W1, Ch)
    y = y + bup
    dY = x2.shape[1] - y.shape[1]
    dX = x2.shape[2] - y.shape[2]
    if dY or dX:
        y = jnp.pad(y, ((0, 0), (dY // 2, dY - dY // 2),
                        (dX // 2, dX - dX // 2), (0, 0)))
    h = jnp.concatenate([x2, y], axis=-1)
    h = _ref_conv_bn_relu(h, params["conv1"])
    h = _ref_conv_bn_relu(h, params["conv2"])
    return jnp.transpose(h, (0, 3, 1, 2))


# ----------------------------------------------------------------------------
if __name__ == "__main__":
    key = jax.random.PRNGKey(0)
    kx1, kx2, kp = jax.random.split(key, 3)

    # Up(in_channels=32, out_channels=16):
    #   x1: (N, 32, 8, 8) deep feature;  x2: (N, 16, 16, 16) skip connection.
    N, C1, H1, W1 = 2, 32, 8, 8
    C2, H2, W2 = C1 // 2, 2 * H1, 2 * W1
    out_channels = 16

    x1 = jax.random.normal(kx1, (N, C1, H1, W1), jnp.float32)
    x2 = jax.random.normal(kx2, (N, C2, H2, W2), jnp.float32)
    params = init_up_params(kp, C1, out_channels)

    ref = ref_up_forward(x1, x2, params)

    # multi-strip path (exercises the 2-row halo logic): H=16 -> 2 strips of 8
    out = jax.block_until_ready(up_forward(x1, x2, params, rows_per_strip=8))
    assert out.shape == (N, out_channels, H2, W2), out.shape
    # bf16 MXU operands vs f32 reference -> loose-ish tolerance
    np.testing.assert_allclose(np.asarray(out), np.asarray(ref),
                               rtol=5e-2, atol=5e-2)

    # auto strip selection (single strip at this size)
    out_auto = jax.block_until_ready(up_forward(x1, x2, params))
    np.testing.assert_allclose(np.asarray(out_auto), np.asarray(ref),
                               rtol=5e-2, atol=5e-2)

    print("KERNEL_OK")
</pallas_src>

<mosaic_0001>
module attributes {stable_mosaic.version = 11 : i64} {
  func.func @_upsample_kernel(%arg0: i32, %arg1: i32, %arg2: memref<1x64x32xbf16, #tpu.memory_space<vmem>>, %arg3: memref<32x64xbf16, #tpu.memory_space<vmem>>, %arg4: memref<1x64xf32, #tpu.memory_space<vmem>>, %arg5: memref<1x8x2x8x32xbf16, #tpu.memory_space<vmem>>) attributes {dimension_semantics = [#tpu.dimension_semantics<parallel>, #tpu.dimension_semantics<parallel>], iteration_bounds = array<i64: 2, 1>, scalar_prefetch = 0 : i64, scratch_operands = 0 : i64, tpu.core_type = #tpu.core_type<tc>, window_params = [{transform_indices = @transform_0, window_bounds = array<i64: 1, 64, 32>}, {pipeline_mode = #tpu.pipeline_mode<synchronous>, transform_indices = @transform_1, window_bounds = array<i64: 32, 64>}, {pipeline_mode = #tpu.pipeline_mode<synchronous>, transform_indices = @transform_2, window_bounds = array<i64: 1, 64>}, {transform_indices = @transform_3, window_bounds = array<i64: 1, 8, 2, 8, 32>}]} {
    %c0 = arith.constant 0 : index
    %c0_0 = arith.constant 0 : index
    %c0_1 = arith.constant 0 : index
    %0 = vector.load %arg2[%c0, %c0_0, %c0_1] : memref<1x64x32xbf16, #tpu.memory_space<vmem>>, vector<1x64x32xbf16>
    %1 = vector.shape_cast %0 : vector<1x64x32xbf16> to vector<64x32xbf16>
    %c0_2 = arith.constant 0 : index
    %c0_3 = arith.constant 0 : index
    %2 = vector.load %arg3[%c0_2, %c0_3] : memref<32x64xbf16, #tpu.memory_space<vmem>>, vector<32x64xbf16>
    %cst = arith.constant dense<0.000000e+00> : vector<64x64xf32>
    %3 = tpu.matmul %1, %2, %cst {dimension_numbers = #tpu.dot_dimension_numbers<[1], [0], [0], [1], [0, 0, 1, 1], [], []>} : vector<64x32xbf16>, vector<32x64xbf16>, vector<64x64xf32> -> vector<64x64xf32>
    %c0_4 = arith.constant 0 : index
    %c0_5 = arith.constant 0 : index
    %4 = vector.load %arg4[%c0_4, %c0_5] : memref<1x64xf32, #tpu.memory_space<vmem>>, vector<1x64xf32>
    %5 = vector.broadcast %4 : vector<1x64xf32> to vector<64x64xf32>
    %6 = arith.addf %3, %5 : vector<64x64xf32>
    %7 = arith.truncf %6 : vector<64x64xf32> to vector<64x64xbf16>
    %8 = vector.extract_strided_slice %7 {offsets = [0, 0], sizes = [64, 32], strides = [1, 1]} : vector<64x64xbf16> to vector<64x32xbf16>
    %9 = vector.extract_strided_slice %8 {offsets = [0, 0], sizes = [8, 32], strides = [1, 1]} : vector<64x32xbf16> to vector<8x32xbf16>
    %c0_6 = arith.constant 0 : index
    %c0_7 = arith.constant 0 : index
    %c0_8 = arith.constant 0 : index
    %c0_9 = arith.constant 0 : index
    %c0_10 = arith.constant 0 : index
    %10 = vector.load %arg5[%c0_6, %c0_7, %c0_8, %c0_9, %c0_10] : memref<1x8x2x8x32xbf16, #tpu.memory_space<vmem>>, vector<1x1x1x8x32xbf16>
    %11 = vector.shape_cast %10 : vector<1x1x1x8x32xbf16> to vector<8x32xbf16>
    %12 = vector.shape_cast %9 : vector<8x32xbf16> to vector<1x1x1x8x32xbf16>
    tpu.vector_store %arg5[%c0_6, %c0_7, %c0_8, %c0_9, %c0_10], %12 {strides = array<i32>} : memref<1x8x2x8x32xbf16, #tpu.memory_space<vmem>>, vector<1x1x1x8x32xbf16>,
    %13 = vector.extract_strided_slice %8 {offsets = [8, 0], sizes = [8, 32], strides = [1, 1]} : vector<64x32xbf16> to vector<8x32xbf16>
    %c0_11 = arith.constant 0 : index
    %c1 = arith.constant 1 : index
    %c0_12 = arith.constant 0 : index
    %c0_13 = arith.constant 0 : index
    %c0_14 = arith.constant 0 : index
    %14 = vector.load %arg5[%c0_11, %c1, %c0_12, %c0_13, %c0_14] : memref<1x8x2x8x32xbf16, #tpu.memory_space<vmem>>, vector<1x1x1x8x32xbf16>
    %15 = vector.shape_cast %14 : vector<1x1x1x8x32xbf16> to vector<8x32xbf16>
    %16 = vector.shape_cast %13 : vector<8x32xbf16> to vector<1x1x1x8x32xbf16>
    tpu.vector_store %arg5[%c0_11, %c1, %c0_12, %c0_13, %c0_14], %16 {strides = array<i32>} : memref<1x8x2x8x32xbf16, #tpu.memory_space<vmem>>, vector<1x1x1x8x32xbf16>,
    %17 = vector.extract_strided_slice %8 {offsets = [16, 0], sizes = [8, 32], strides = [1, 1]} : vector<64x32xbf16> to vector<8x32xbf16>
    %c0_15 = arith.constant 0 : index
    %c2 = arith.constant 2 : index
    %c0_16 = arith.constant 0 : index
    %c0_17 = arith.constant 0 : index
    %c0_18 = arith.constant 0 : index
    %18 = vector.load %arg5[%c0_15, %c2, %c0_16, %c0_17, %c0_18] : memref<1x8x2x8x32xbf16, #tpu.memory_space<vmem>>, vector<1x1x1x8x32xbf16>
    %19 = vector.shape_cast %18 : vector<1x1x1x8x32xbf16> to vector<8x32xbf16>
    %20 = vector.shape_cast %17 : vector<8x32xbf16> to vector<1x1x1x8x32xbf16>
    tpu.vector_store %arg5[%c0_15, %c2, %c0_16, %c0_17, %c0_18], %20 {strides = array<i32>} : memref<1x8x2x8x32xbf16, #tpu.memory_space<vmem>>, vector<1x1x1x8x32xbf16>,
    %21 = vector.extract_strided_slice %8 {offsets = [24, 0], sizes = [8, 32], strides = [1, 1]} : vector<64x32xbf16> to vector<8x32xbf16>
    %c0_19 = arith.constant 0 : index
    %c3 = arith.constant 3 : index
    %c0_20 = arith.constant 0 : index
    %c0_21 = arith.constant 0 : index
    %c0_22 = arith.constant 0 : index
    %22 = vector.load %arg5[%c0_19, %c3, %c0_20, %c0_21, %c0_22] : memref<1x8x2x8x32xbf16, #tpu.memory_space<vmem>>, vector<1x1x1x8x32xbf16>
    %23 = vector.shape_cast %22 : vector<1x1x1x8x32xbf16> to vector<8x32xbf16>
    %24 = vector.shape_cast %21 : vector<8x32xbf16> to vector<1x1x1x8x32xbf16>
    tpu.vector_store %arg5[%c0_19, %c3, %c0_20, %c0_21, %c0_22], %24 {strides = array<i32>} : memref<1x8x2x8x32xbf16, #tpu.memory_space<vmem>>, vector<1x1x1x8x32xbf16>,
    %25 = vector.extract_strided_slice %8 {offsets = [32, 0], sizes = [8, 32], strides = [1, 1]} : vector<64x32xbf16> to vector<8x32xbf16>
    %c0_23 = arith.constant 0 : index
    %c4 = arith.constant 4 : index
    %c0_24 = arith.constant 0 : index
    %c0_25 = arith.constant 0 : index
    %c0_26 = arith.constant 0 : index
    %26 = vector.load %arg5[%c0_23, %c4, %c0_24, %c0_25, %c0_26] : memref<1x8x2x8x32xbf16, #tpu.memory_space<vmem>>, vector<1x1x1x8x32xbf16>
    %27 = vector.shape_cast %26 : vector<1x1x1x8x32xbf16> to vector<8x32xbf16>
    %28 = vector.shape_cast %25 : vector<8x32xbf16> to vector<1x1x1x8x32xbf16>
    tpu.vector_store %arg5[%c0_23, %c4, %c0_24, %c0_25, %c0_26], %28 {strides = array<i32>} : memref<1x8x2x8x32xbf16, #tpu.memory_space<vmem>>, vector<1x1x1x8x32xbf16>,
    %29 = vector.extract_strided_slice %8 {offsets = [40, 0], sizes = [8, 32], strides = [1, 1]} : vector<64x32xbf16> to vector<8x32xbf16>
    %c0_27 = arith.constant 0 : index
    %c5 = arith.constant 5 : index
    %c0_28 = arith.constant 0 : index
    %c0_29 = arith.constant 0 : index
    %c0_30 = arith.constant 0 : index
    %30 = vector.load %arg5[%c0_27, %c5, %c0_28, %c0_29, %c0_30] : memref<1x8x2x8x32xbf16, #tpu.memory_space<vmem>>, vector<1x1x1x8x32xbf16>
    %31 = vector.shape_cast %30 : vector<1x1x1x8x32xbf16> to vector<8x32xbf16>
    %32 = vector.shape_cast %29 : vector<8x32xbf16> to vector<1x1x1x8x32xbf16>
    tpu.vector_store %arg5[%c0_27, %c5, %c0_28, %c0_29, %c0_30], %32 {strides = array<i32>} : memref<1x8x2x8x32xbf16, #tpu.memory_space<vmem>>, vector<1x1x1x8x32xbf16>,
    %33 = vector.extract_strided_slice %8 {offsets = [48, 0], sizes = [8, 32], strides = [1, 1]} : vector<64x32xbf16> to vector<8x32xbf16>
    %c0_31 = arith.constant 0 : index
    %c6 = arith.constant 6 : index
    %c0_32 = arith.constant 0 : index
    %c0_33 = arith.constant 0 : index
    %c0_34 = arith.constant 0 : index
    %34 = vector.load %arg5[%c0_31, %c6, %c0_32, %c0_33, %c0_34] : memref<1x8x2x8x32xbf16, #tpu.memory_space<vmem>>, vector<1x1x1x8x32xbf16>
    %35 = vector.shape_cast %34 : vector<1x1x1x8x32xbf16> to vector<8x32xbf16>
    %36 = vector.shape_cast %33 : vector<8x32xbf16> to vector<1x1x1x8x32xbf16>
    tpu.vector_store %arg5[%c0_31, %c6, %c0_32, %c0_33, %c0_34], %36 {strides = array<i32>} : memref<1x8x2x8x32xbf16, #tpu.memory_space<vmem>>, vector<1x1x1x8x32xbf16>,
    %37 = vector.extract_strided_slice %8 {offsets = [56, 0], sizes = [8, 32], strides = [1, 1]} : vector<64x32xbf16> to vector<8x32xbf16>
    %c0_35 = arith.constant 0 : index
    %c7 = arith.constant 7 : index
    %c0_36 = arith.constant 0 : index
    %c0_37 = arith.constant 0 : index
    %c0_38 = arith.constant 0 : index
    %38 = vector.load %arg5[%c0_35, %c7, %c0_36, %c0_37, %c0_38] : memref<1x8x2x8x32xbf16, #tpu.memory_space<vmem>>, vector<1x1x1x8x32xbf16>
    %39 = vector.shape_cast %38 : vector<1x1x1x8x32xbf16> to vector<8x32xbf16>
    %40 = vector.shape_cast %37 : vector<8x32xbf16> to vector<1x1x1x8x32xbf16>
    tpu.vector_store %arg5[%c0_35, %c7, %c0_36, %c0_37, %c0_38], %40 {strides = array<i32>} : memref<1x8x2x8x32xbf16, #tpu.memory_space<vmem>>, vector<1x1x1x8x32xbf16>,
    %41 = vector.extract_strided_slice %7 {offsets = [0, 32], sizes = [64, 32], strides = [1, 1]} : vector<64x64xbf16> to vector<64x32xbf16>
    %42 = vector.extract_strided_slice %41 {offsets = [0, 0], sizes = [8, 32], strides = [1, 1]} : vector<64x32xbf16> to vector<8x32xbf16>
    %c0_39 = arith.constant 0 : index
    %c0_40 = arith.constant 0 : index
    %c1_41 = arith.constant 1 : index
    %c0_42 = arith.constant 0 : index
    %c0_43 = arith.constant 0 : index
    %43 = vector.load %arg5[%c0_39, %c0_40, %c1_41, %c0_42, %c0_43] : memref<1x8x2x8x32xbf16, #tpu.memory_space<vmem>>, vector<1x1x1x8x32xbf16>
    %44 = vector.shape_cast %43 : vector<1x1x1x8x32xbf16> to vector<8x32xbf16>
    %45 = vector.shape_cast %42 : vector<8x32xbf16> to vector<1x1x1x8x32xbf16>
    tpu.vector_store %arg5[%c0_39, %c0_40, %c1_41, %c0_42, %c0_43], %45 {strides = array<i32>} : memref<1x8x2x8x32xbf16, #tpu.memory_space<vmem>>, vector<1x1x1x8x32xbf16>,
    %46 = vector.extract_strided_slice %41 {offsets = [8, 0], sizes = [8, 32], strides = [1, 1]} : vector<64x32xbf16> to vector<8x32xbf16>
    %c0_44 = arith.constant 0 : index
    %c1_45 = arith.constant 1 : index
    %c1_46 = arith.constant 1 : index
    %c0_47 = arith.constant 0 : index
    %c0_48 = arith.constant 0 : index
    %47 = vector.load %arg5[%c0_44, %c1_45, %c1_46, %c0_47, %c0_48] : memref<1x8x2x8x32xbf16, #tpu.memory_space<vmem>>, vector<1x1x1x8x32xbf16>
    %48 = vector.shape_cast %47 : vector<1x1x1x8x32xbf16> to vector<8x32xbf16>
    %49 = vector.shape_cast %46 : vector<8x32xbf16> to vector<1x1x1x8x32xbf16>
    tpu.vector_store %arg5[%c0_44, %c1_45, %c1_46, %c0_47, %c0_48], %49 {strides = array<i32>} : memref<1x8x2x8x32xbf16, #tpu.memory_space<vmem>>, vector<1x1x1x8x32xbf16>,
    %50 = vector.extract_strided_slice %41 {offsets = [16, 0], sizes = [8, 32], strides = [1, 1]} : vector<64x32xbf16> to vector<8x32xbf16>
    %c0_49 = arith.constant 0 : index
    %c2_50 = arith.constant 2 : index
    %c1_51 = arith.constant 1 : index
    %c0_52 = arith.constant 0 : index
    %c0_53 = arith.constant 0 : index
    %51 = vector.load %arg5[%c0_49, %c2_50, %c1_51, %c0_52, %c0_53] : memref<1x8x2x8x32xbf16, #tpu.memory_space<vmem>>, vector<1x1x1x8x32xbf16>
    %52 = vector.shape_cast %51 : vector<1x1x1x8x32xbf16> to vector<8x32xbf16>
    %53 = vector.shape_cast %50 : vector<8x32xbf16> to vector<1x1x1x8x32xbf16>
    tpu.vector_store %arg5[%c0_49, %c2_50, %c1_51, %c0_52, %c0_53], %53 {strides = array<i32>} : memref<1x8x2x8x32xbf16, #tpu.memory_space<vmem>>, vector<1x1x1x8x32xbf16>,
    %54 = vector.extract_strided_slice %41 {offsets = [24, 0], sizes = [8, 32], strides = [1, 1]} : vector<64x32xbf16> to vector<8x32xbf16>
    %c0_54 = arith.constant 0 : index
    %c3_55 = arith.constant 3 : index
    %c1_56 = arith.constant 1 : index
    %c0_57 = arith.constant 0 : index
    %c0_58 = arith.constant 0 : index
    %55 = vector.load %arg5[%c0_54, %c3_55, %c1_56, %c0_57, %c0_58] : memref<1x8x2x8x32xbf16, #tpu.memory_space<vmem>>, vector<1x1x1x8x32xbf16>
    %56 = vector.shape_cast %55 : vector<1x1x1x8x32xbf16> to vector<8x32xbf16>
    %57 = vector.shape_cast %54 : vector<8x32xbf16> to vector<1x1x1x8x32xbf16>
    tpu.vector_store %arg5[%c0_54, %c3_55, %c1_56, %c0_57, %c0_58], %57 {strides = array<i32>} : memref<1x8x2x8x32xbf16, #tpu.memory_space<vmem>>, vector<1x1x1x8x32xbf16>,
    %58 = vector.extract_strided_slice %41 {offsets = [32, 0], sizes = [8, 32], strides = [1, 1]} : vector<64x32xbf16> to vector<8x32xbf16>
    %c0_59 = arith.constant 0 : index
    %c4_60 = arith.constant 4 : index
    %c1_61 = arith.constant 1 : index
    %c0_62 = arith.constant 0 : index
    %c0_63 = arith.constant 0 : index
    %59 = vector.load %arg5[%c0_59, %c4_60, %c1_61, %c0_62, %c0_63] : memref<1x8x2x8x32xbf16, #tpu.memory_space<vmem>>, vector<1x1x1x8x32xbf16>
    %60 = vector.shape_cast %59 : vector<1x1x1x8x32xbf16> to vector<8x32xbf16>
    %61 = vector.shape_cast %58 : vector<8x32xbf16> to vector<1x1x1x8x32xbf16>
    tpu.vector_store %arg5[%c0_59, %c4_60, %c1_61, %c0_62, %c0_63], %61 {strides = array<i32>} : memref<1x8x2x8x32xbf16, #tpu.memory_space<vmem>>, vector<1x1x1x8x32xbf16>,
    %62 = vector.extract_strided_slice %41 {offsets = [40, 0], sizes = [8, 32], strides = [1, 1]} : vector<64x32xbf16> to vector<8x32xbf16>
    %c0_64 = arith.constant 0 : index
    %c5_65 = arith.constant 5 : index
    %c1_66 = arith.constant 1 : index
    %c0_67 = arith.constant 0 : index
    %c0_68 = arith.constant 0 : index
    %63 = vector.load %arg5[%c0_64, %c5_65, %c1_66, %c0_67, %c0_68] : memref<1x8x2x8x32xbf16, #tpu.memory_space<vmem>>, vector<1x1x1x8x32xbf16>
    %64 = vector.shape_cast %63 : vector<1x1x1x8x32xbf16> to vector<8x32xbf16>
    %65 = vector.shape_cast %62 : vector<8x32xbf16> to vector<1x1x1x8x32xbf16>
    tpu.vector_store %arg5[%c0_64, %c5_65, %c1_66, %c0_67, %c0_68], %65 {strides = array<i32>} : memref<1x8x2x8x32xbf16, #tpu.memory_space<vmem>>, vector<1x1x1x8x32xbf16>,
    %66 = vector.extract_strided_slice %41 {offsets = [48, 0], sizes = [8, 32], strides = [1, 1]} : vector<64x32xbf16> to vector<8x32xbf16>
    %c0_69 = arith.constant 0 : index
    %c6_70 = arith.constant 6 : index
    %c1_71 = arith.constant 1 : index
    %c0_72 = arith.constant 0 : index
    %c0_73 = arith.constant 0 : index
    %67 = vector.load %arg5[%c0_69, %c6_70, %c1_71, %c0_72, %c0_73] : memref<1x8x2x8x32xbf16, #tpu.memory_space<vmem>>, vector<1x1x1x8x32xbf16>
    %68 = vector.shape_cast %67 : vector<1x1x1x8x32xbf16> to vector<8x32xbf16>
    %69 = vector.shape_cast %66 : vector<8x32xbf16> to vector<1x1x1x8x32xbf16>
    tpu.vector_store %arg5[%c0_69, %c6_70, %c1_71, %c0_72, %c0_73], %69 {strides = array<i32>} : memref<1x8x2x8x32xbf16, #tpu.memory_space<vmem>>, vector<1x1x1x8x32xbf16>,
    %70 = vector.extract_strided_slice %41 {offsets = [56, 0], sizes = [8, 32], strides = [1, 1]} : vector<64x32xbf16> to vector<8x32xbf16>
    %c0_74 = arith.constant 0 : index
    %c7_75 = arith.constant 7 : index
    %c1_76 = arith.constant 1 : index
    %c0_77 = arith.constant 0 : index
    %c0_78 = arith.constant 0 : index
    %71 = vector.load %arg5[%c0_74, %c7_75, %c1_76, %c0_77, %c0_78] : memref<1x8x2x8x32xbf16, #tpu.memory_space<vmem>>, vector<1x1x1x8x32xbf16>
    %72 = vector.shape_cast %71 : vector<1x1x1x8x32xbf16> to vector<8x32xbf16>
    %73 = vector.shape_cast %70 : vector<8x32xbf16> to vector<1x1x1x8x32xbf16>
    tpu.vector_store %arg5[%c0_74, %c7_75, %c1_76, %c0_77, %c0_78], %73 {strides = array<i32>} : memref<1x8x2x8x32xbf16, #tpu.memory_space<vmem>>, vector<1x1x1x8x32xbf16>,
    return
  }
  func.func @transform_0(%arg0: i32, %arg1: i32) -> (i32, i32, i32) {
    %c0_i32 = arith.constant 0 : i32
    %c0_i32_0 = arith.constant 0 : i32
    return %arg0, %arg1, %c0_i32 : i32, i32, i32
  }
  func.func @transform_1(%arg0: i32, %arg1: i32) -> (i32, i32) {
    %c0_i32 = arith.constant 0 : i32
    %c0_i32_0 = arith.constant 0 : i32
    %c0_i32_1 = arith.constant 0 : i32
    return %c0_i32, %c0_i32_0 : i32, i32
  }
  func.func @transform_2(%arg0: i32, %arg1: i32) -> (i32, i32) {
    %c0_i32 = arith.constant 0 : i32
    %c0_i32_0 = arith.constant 0 : i32
    %c0_i32_1 = arith.constant 0 : i32
    return %c0_i32, %c0_i32_0 : i32, i32
  }
  func.func @transform_3(%arg0: i32, %arg1: i32) -> (i32, i32, i32, i32, i32) {
    %c0_i32 = arith.constant 0 : i32
    %c0_i32_0 = arith.constant 0 : i32
    %c0_i32_1 = arith.constant 0 : i32
    %c0_i32_2 = arith.constant 0 : i32
    return %arg0, %arg1, %c0_i32, %c0_i32_0, %c0_i32_1 : i32, i32, i32, i32, i32
  }
}

</mosaic_0001>

<bundles_post_ra>
// kernel: tpu_custom_call.1
= control target key start
LH: loop header
LB: loop body
LE: loop exit
PB: predicated region body
PF: predicated region fallthrough
CT: control target
= control target key end

     0   :  { %8 = vsyncpa [#allocation3], 0  ;;  %s920_s0 = inlined_call_operand.vmem [shape: bf16[2,64,32], index: 0, kind: input, shape index: {}]   ;;  %s921_s1 = inlined_call_operand.vmem [shape: bf16[32,64], index: 1, kind: input, shape index: {}]   ;;  %s922_s2 = inlined_call_operand.vmem [shape: f32[1,64], index: 2, kind: input, shape index: {}]   ;;  %s923_s3 = inlined_call_operand.hbm [shape: bf16[2,8,2,8,32], index: 3, kind: output, shape index: {}]  }
   0x1   :  { %10 = vsyncpa [#allocation3 + $0x1], 0  ;;  %s757_s12 = smov 0   ;;  %s759_s13 = smov 0  }
   0x2   :  { %s761_s14 = smov 0   ;;  %s763_s15 = smov 0  }
   0x3   :  { %s765_s16 = smov 0   ;;  %s767_s17 = smov 0  }
   0x4 LB: > { %s510_s18 = sadd.s32 4294967295, %s731_s17   ;;  %s511_s19 = sadd.s32 4294967294, %s731_s17   ;;  %s731_s17 = sphi %s767_s17, %s16_s17   ;;  %s727_s16 = sphi %s765_s16, %s930_s16   ;;  %s723_s15 = sphi %s763_s15, %s929_s15   ;;  %s719_s14 = sphi %s761_s14, %s928_s14   ;;  %s715_s13 = sphi %s759_s13, %s927_s13   ;;  %s711_s12 = sphi %s757_s12, %s926_s12  }
   0x5   : > { %s28_s20 = sadd.s32 1, %s727_s16  ;;  %s107_s21 = sadd.s32 1, %s719_s14 }
   0x6   : > { %p30_p0 = scmp.ge.s32.totalorder %s28_s20, 2  ;;  %p117_p1 = scmp.ne.s32.totalorder %s719_s14, %s715_s13 }
   0x7   : > { %p118_p2 = scmp.eq.s32.totalorder %s510_s18, 1  ;;  %p123_p3 = scmp.ne.s32.totalorder %s715_s13, %s711_s12 }
   0x8   : > { %s932_s20 = smov (%p30_p0, %s28_s20), 0  ;;  %p124_p5 = scmp.eq.s32.totalorder %s511_s19, 1 }
   0x9   : > { %p797_p4 = por %p118_p2, %p117_p1  ;;  %s102_s23 = ssub.s32 %s727_s16, %s932_s20 }
   0xa   : > { %p514_p6 = scmp.ge.s32.totalorder %s731_s17, 1  ;;  %p105_p7 = scmp.eq.s32.totalorder %s102_s23, 0 }
   0xb   : > { %p804_p8 = por %p124_p5, %p123_p3  ;;  %p161_p9 = scmp.lt.s32.totalorder %s731_s17, 3 }
   0xc   : > { %s810_s25 = scalar_select %p105_p7, %s719_s14, %s107_s21  }
   0xd   : > { %p162_p10 = pnand %p514_p6, %p161_p9 }
   0xe   : > { %v647_v0 = vld [vmem:[%s921_s1] sm:$0xff] (!%p162_p10)   ;;  %p190_p11 = scmp.lt.s32.totalorder (!%p162_p10), %s723_s15, 1  ;;  %v648_v1 = vld [vmem:[%s921_s1 + $0x8] sm:$0xff] (!%p162_p10)   ;;  %vm252_vm0 = vcmask (!%p162_p10), 261120   ;;  %s186_s10 = sand.u32 (!%p162_p10), 1, %s715_s13   ;;  %vm334_vm1 = vcmask (!%p162_p10), 257024  }
   0xf   : > { %165 = sbr.rel (%p162_p10) target bundleno = 387 (0x183), region = 32  ;;  %573 = vmatprep.subr.bf16.mxu0 (!%p162_p10), %v647_v0  ;;  %585 = vmatprep.subr.bf16.mxu1 (!%p162_p10), %v647_v0  ;;  %v518_v6 = vld [vmem:[%s922_s2] ss:$0 sm:$0xff] (!%p162_p10)  ;;  %s515_s11 = sshll.u32 (!%p162_p10), %s186_s10, 6 }
  0x10   : > { %574 = vmatpush3.bf16.msra.mxu0 (!%p162_p10), %v647_v0  ;;  %587 = vmatpush3.bf16.msra.mxu1 (!%p162_p10), %v647_v0  ;;  %s733_s18 = smov (!%p162_p10), 96   ;;  %s829_s19 = scalar_lea.vmem (!%p162_p10), [#allocation2], %s515_s11 }
  0x11   : > { %575 = vmatprep.subr.bf16.mxu0 (!%p162_p10), %v648_v1  ;;  %586 = vmatprep.subr.bf16.mxu1 (!%p162_p10), %v648_v1  ;;  %s566_s21 = sshll.u32 (!%p162_p10), %s723_s15, 10  ;;  %s431_s23 = sshll.u32 (!%p162_p10), %s829_s19, 4  ;;  %s866_s23 = int_to_ptr.vmem [resolvable:$true] %s431_s23 }
  0x12   : > { %s864_s28 = scalar_lea.hbm (!%p162_p10), %s923_s3, %s566_s21  ;;  %s653_s29 = scalar_lea.vmem (!%p162_p10), %s866_s23, 1024 }
  0x13   : > { %p654_p12 = scmp.ne.s32.totalorder (!%p162_p10), %s866_s23, %s653_s29 }
  0x14   : > { %576 = vmatpush3.bf16.msra.mxu0 (!%p162_p10), %v648_v1  ;;  %588 = vmatpush3.bf16.msra.mxu1 (!%p162_p10), %v648_v1 }
  0x15   : > { %p655_p13 = pnand (!%p162_p10), %p654_p12, %p797_p4 }
  0x16   : > { %s191_s30 = scalar_select %p190_p11, %s723_s15, 1 }
  0x17   : > { %s874_s15 = scalar_lea.sflag [#allocation3], %s186_s10  ;;  %p656_p0 = pneg %p655_p13 }
  0x18   : > { %s557_s4 = sshll.u32 %s191_s30, 5  ;;  %s734_s30 = smov [#allocation2]  }
  0x19   : > { %s197_s7 = scalar_lea.vmem %s920_s0, %s557_s4  ;;  %s657_s4 = sshll.u32 %s734_s30, 4  ;;  %s658_s4 = int_to_ptr.vmem [resolvable:$false] %s657_s4 }
  0x1a   : > { %v649_v2 = vld [vmem:[%s197_s7] sm:$0xff]   ;;  %v650_v3 = vld [vmem:[%s197_s7 + $0x8] sm:$0xff]   ;;  %v651_v4 = vld [vmem:[%s197_s7 + $0x10] sm:$0xff]   ;;  %s659_s5 = scalar_lea.vmem %s658_s4, 2048  ;;  %p660_p1 = scmp.lt.s32.totalorder %s866_s23, %s658_s4 }
  0x1b   : > { %577 = vmatprep.mubr.msk.bf16.mxu0 %vm252_vm0, %v649_v2  ;;  %v652_v5 = vld [vmem:[%s197_s7 + $0x18] sm:$0xff]   ;;  %581 = vmatprep.mubr.msk.bf16.mxu1 %vm252_vm0, %v651_v4  ;;  %p661_p2 = scmp.lt.s32.totalorder %s659_s5, %s653_s29 }
  0x1c   : > { %578 = vmatmul.mubr.msk.bf16.vlgmr.msra.gmra.mrb[0].mxu0 %vm252_vm0, %v650_v3  ;;  %582 = vmatmul.mubr.msk.bf16.vlgmr.msra.gmra.mrb[0].mxu1 %vm252_vm0, %v652_v5 }
  0x1d   : > { %p662_p3 = por %p661_p2, %p660_p1 }
  0x1f   : > { %p663_p5 = pnand %p662_p3, %p656_p0 }
  0xef   : > { %v579_v7 = vpop.f32.mrb[0].mxu0  ;;  %v583_v10 = vpop.f32.mrb[0].mxu1 }
  0xf0   : > { %v308_v8 = vadd.f32 %v579_v7, %v518_v6  ;;  %v299_v9 = vpop.f32.mrb[1].mxu0  ;;  %v324_v12 = vadd.f32 %v583_v10, %v518_v6  ;;  %v315_v14 = vpop.f32.mrb[1].mxu1 }
  0xf1   : > { %v300_v11 = vadd.f32 %v518_v6, %v299_v9  ;;  %v580_v13 = vpop.f32.mrb[2].mxu0  ;;  %v316_v16 = vadd.f32 %v518_v6, %v315_v14  ;;  %v584_v18 = vpop.f32.mrb[2].mxu1 }
  0xf2   : > { %v311_v15 = vadd.f32 %v580_v13, %v518_v6  ;;  %v302_v17 = vpop.f32.mrb[3].mxu0  ;;  %v563_v19 = vpack.c.bf16 %v308_v8, %v308_v8  ;;  %v327_v21 = vadd.f32 %v584_v18, %v518_v6  ;;  %v318_v22 = vpop.f32.mrb[3].mxu1  ;;  %v565_v34 = vpack.c.bf16 %v324_v12, %v324_v12 }
  0xf3   : > { %v303_v20 = vadd.f32 %v518_v6, %v302_v17  ;;  %v562_v23 = vpack.c.bf16 %v300_v11, %v300_v11  ;;  %v564_v26 = vpack.c.bf16 %v316_v16, %v316_v16  ;;  %v319_v27 = vadd.f32 %v518_v6, %v318_v22 }
  0xf4   : > { %v331_v24 = vpack.c.bf16 %v311_v15, %v308_v8  ;;  %v559_v25 = vpack.c.bf16 %v311_v15, %v311_v15  ;;  %380 = vrot.lane.b32.xlu1 %v563_v19, %s733_s18  ;;  %v333_v30 = vpack.c.bf16 %v327_v21, %v324_v12  ;;  %v561_v31 = vpack.c.bf16 %v327_v21, %v327_v21 }
  0xf5   : > { %v330_v28 = vpack.c.bf16 %v303_v20, %v300_v11  ;;  %v558_v29 = vpack.c.bf16 %v303_v20, %v303_v20  ;;  %368 = vrot.lane.b32.xlu0 %v562_v23, %s733_s18  ;;  %v332_v32 = vpack.c.bf16 %v319_v27, %v316_v16  ;;  %v560_v33 = vpack.c.bf16 %v319_v27, %v319_v27 }
  0xf6   : > { %531 = vst.msk [vmem:[%s829_s19 + $0x10] sm:$0xf] %vm334_vm1, %v331_v24  ;;  %533 = vst.msk [vmem:[%s829_s19 + $0x18] sm:$0xf] %vm334_vm1, %v559_v25 }
  0xf7   : > { %335 = vst.msk [vmem:[%s829_s19] sm:$0xf] %vm334_vm1, %v330_v28  ;;  %530 = vst.msk [vmem:[%s829_s19 + $0x8] sm:$0xf] %vm334_vm1, %v558_v29 }
  0xf8   : > { %537 = vst.msk [vmem:[%s829_s19 + $0x30] sm:$0xf] %vm334_vm1, %v333_v30  ;;  %539 = vst.msk [vmem:[%s829_s19 + $0x38] sm:$0xf] %vm334_vm1, %v561_v31  ;;  %385 = vrot.lane.b32.xlu1 %v559_v25, %s733_s18 }
  0xf9   : > { %534 = vst.msk [vmem:[%s829_s19 + $0x20] sm:$0xf] %vm334_vm1, %v332_v32  ;;  %536 = vst.msk [vmem:[%s829_s19 + $0x28] sm:$0xf] %vm334_vm1, %v560_v33  ;;  %392 = vrot.lane.b32.xlu0 %v564_v26, %s733_s18 }
  0xfc   : > { %397 = vrot.lane.b32.xlu1 %v560_v33, %s733_s18 }
  0xfd   : > { %373 = vrot.lane.b32.xlu0 %v558_v29, %s733_s18 }
 0x100   : > { %409 = vrot.lane.b32.xlu1 %v561_v31, %s733_s18 }
 0x101   : > { %404 = vrot.lane.b32.xlu0 %v565_v34, %s733_s18 }
 0x166   : > { %v381_v35 = vpop.permute.xlu1 %380 }
 0x167   : > { %544 = vst.msk [vmem:[%s829_s19 + $0x14] sm:$0xf] %vm334_vm1, %v381_v35  ;;  %v369_v36 = vpop.permute.xlu0 %368 }
 0x168   : > { %541 = vst.msk [vmem:[%s829_s19 + $0x4] sm:$0xf] %vm334_vm1, %v369_v36 }
 0x16a   : > { %v386_v37 = vpop.permute.xlu1 %385 }
 0x16b   : > { %545 = vst.msk [vmem:[%s829_s19 + $0x1c] sm:$0xf] %vm334_vm1, %v386_v37  ;;  %v393_v38 = vpop.permute.xlu0 %392 }
 0x16c   : > { %547 = vst.msk [vmem:[%s829_s19 + $0x24] sm:$0xf] %vm334_vm1, %v393_v38 }
 0x16e   : > { %v398_v39 = vpop.permute.xlu1 %397 }
 0x16f   : > { %548 = vst.msk [vmem:[%s829_s19 + $0x2c] sm:$0xf] %vm334_vm1, %v398_v39  ;;  %v374_v40 = vpop.permute.xlu0 %373 }
 0x170   : > { %542 = vst.msk [vmem:[%s829_s19 + $0xc] sm:$0xf] %vm334_vm1, %v374_v40 }
 0x172   : > { %v410_v41 = vpop.permute.xlu1 %409 }
 0x173   : > { %551 = vst.msk [vmem:[%s829_s19 + $0x3c] sm:$0xf] %vm334_vm1, %v410_v41  ;;  %v405_v42 = vpop.permute.xlu0 %404 }
 0x174   : > { %550 = vst.msk [vmem:[%s829_s19 + $0x34] sm:$0xf] %vm334_vm1, %v405_v42 }
 0x175   : > { %666 = shalt.err (!%p663_p5)
}
 0x176   : > { %s667_s6 = scalar_lea.hbm %s864_s28, 1024  ;;  %s671_s9 = scalar_lea.hbm %s923_s3, 2048 }
 0x177   : > { %p668_p6 = scmp.ne.s32.totalorder %s864_s28, %s667_s6  ;;  %p672_p10 = scmp.lt.u32.totalorder %s864_s28, %s923_s3 }
 0x178   : > { %p673_p11 = scmp.lt.u32.totalorder %s671_s9, %s667_s6  ;;  %p675_p13 = scmp.lt.u32.totalorder %s667_s6, %s864_s28 }
 0x179   : > { %p669_p7 = pnand %p668_p6, %p797_p4 }
 0x17a   : > { %p674_p12 = por %p673_p11, %p672_p10 }
 0x17b   : > { %p670_p9 = pneg %p669_p7 }
 0x17c   : > { %p676_p0 = por %p675_p13, %p674_p12 }
 0x17e   : > { %p677_p1 = pnand %p676_p0, %p670_p9 }
 0x180   : > { %680 = shalt.err (!%p677_p1)
}
 0x181   : > { %s735_s18 = smov 64   ;;  %s736_s19 = smov 4  }
 0x182   : > { %589 = dma.vmem_to_hbm [thread:$0]  (%p797_p4), %s866_s23, 1024, %s864_s28, %s874_s15, %s735_s18, %s735_s18, %s736_s19  }
 0x183 PF: > { %p595_p2 = scmp.ge.s32.totalorder %s731_s17, 2  ;;  %s446_s21 = sand.u32 1, %s711_s12  }
 0x184   : > { %s447_s26 = scalar_lea.sflag [#allocation3], %s446_s21 }
 0x185   : > { %p592_p3 = pnand %p595_p2, %p804_p8 }
 0x187   : > { %706 = dma.done.wait (!%p592_p3), %s447_s26, 1024  }
 0x188   : > { %708 = vsyncadd (!%p592_p3), %s447_s26, 4294966272  ;;  %s16_s17 = sadd.s32 1, %s731_s17   ;;  %s926_s12 = smov %s715_s13 }
 0x189   : > { %p13_p5 = scmp.ge.s32.totalorder %s16_s17, 4   ;;  %s927_s13 = smov %s719_s14 }
 0x18a   : > { %s928_s14 = smov %s810_s25  ;;  %s929_s15 = smov %s727_s16 }
 0x18b   : > { %s930_s16 = smov %s932_s20  ;;  %15 = sbr.rel (!%p13_p5) target bundleno = 4 (0x4), region = 82 }
 0x192   :  { %452 = vsyncpa [#allocation3], 1 }
 0x193   :  { %454 = vsyncpa [#allocation3 + $0x1], 1 }

</bundles_post_ra>
